<compile_context>
chip_gen: v5e
topology: v5e:2x2
jax: 0.10.0
libtpu: 0.0.40
codegen_flags: <defaults>
</compile_context>

<pallas_src>
import jax
import jax.numpy as jnp
from jax.experimental import pallas as pl
from jax.experimental.pallas import tpu as pltpu


_TM_CAP = 2048  # beyond ~2K rows/tile the per-step overhead is already <<1%


def _round_up(n, m):
    return ((n + m - 1) // m) * m


def _vmem_limit_and_budget():
    """Generation-aware scoped-VMEM limit and pipeline budget (bytes)."""
    cap = None
    try:
        info = pltpu.get_tpu_info()
        for attr in ("vmem_capacity_bytes", "vmem_size_bytes", "vmem_bytes"):
            cap = getattr(info, attr, None)
            if cap:
                break
    except Exception:
        cap = None
    if not cap:
        cap = 64 * 1024 * 1024  # conservative fallback: v7x per-TC VMEM
    # Request ~3/4 of physical VMEM (capped at 96 MiB), and budget ~85% of the
    # request for per-row pipeline buffers + in-kernel intermediates; the rest
    # covers resident weights/biases and compiler scratch.
    limit = min((cap * 3) // 4, 96 * 1024 * 1024)
    budget = (limit * 17) // 20
    return int(limit), int(budget)


def _choose_tm(rows, model_dim, size, x_bytes, out_bytes, compute_bytes, budget):
    """Largest row tile (multiple of 16) whose VMEM footprint fits the budget."""
    per_row = model_dim * (
        2 * x_bytes        # double-buffered input tile
        + 2 * out_bytes    # double-buffered output tile
        + x_bytes          # loaded x value (held live for the residual)
        + compute_bytes    # cast of x to the matmul/compute dtype
        + 4                # f32 epilogue value `out`
        + out_bytes        # cast of `out` to the store dtype
    ) + size * (4 + compute_bytes)  # h (f32) + its compute-dtype cast (tiny)
    tm = budget // max(per_row, 1)
    tm = min(tm, _TM_CAP)
    # v7x megacore: keep at least 2 grid steps so both TensorCores get work.
    if rows > 32:
        tm = min(tm, _round_up((rows + 1) // 2, 16))
    tm = min(tm, _round_up(rows, 16))
    tm = max(16, (tm // 16) * 16)  # multiple of 16: valid sublane tiling for bf16 & f32
    return tm


def _adapter_kernel(x_ref, w1_ref, b1_ref, w2_ref, b2_ref, o_ref):
    # x_ref:  (tm, model_dim)    activations in the caller's dtype
    # w1_ref: (model_dim, size)  down-projection weight (pre-transposed), compute dtype
    # b1_ref: (1, size)          f32
    # w2_ref: (size, model_dim)  up-projection weight (pre-transposed), compute dtype
    # b2_ref: (1, model_dim)     f32
    # o_ref:  (tm, model_dim)    output dtype
    x = x_ref[...]

    # Bottleneck down-projection + bias + ReLU; cast x for the MXU only here,
    # f32 accumulation via preferred_element_type.
    h = jnp.dot(x.astype(w1_ref.dtype), w1_ref[...],
                preferred_element_type=jnp.float32)
    h = jnp.maximum(h + b1_ref[...], 0.0)

    # Up-projection + bias + residual add (residual from the un-cast x, in f32).
    out = jnp.dot(h.astype(w2_ref.dtype), w2_ref[...],
                  preferred_element_type=jnp.float32)
    out = out + b2_ref[...] + x.astype(jnp.float32)
    o_ref[...] = out.astype(o_ref.dtype)


def adapter_forward(x, w1, b1, w2, b2, *, compute_dtype=jnp.bfloat16,
                    out_dtype=None, tm=None):
    """Adapter forward.

    x:  [batch, seq, model_dim] (any float dtype; streamed in its native dtype)
    w1: [model_dim, size]   b1: [1, size]
    w2: [size, model_dim]   b2: [1, model_dim]
    compute_dtype: dtype of the weights / matmul operands (bf16 default;
                   pass jnp.float32 for exact-precision semantics).
    out_dtype:     store dtype; defaults to x.dtype (semantics-preserving).
    """
    batch, seq, model_dim = x.shape
    size = w1.shape[1]
    rows = batch * seq
    out_dtype = x.dtype if out_dtype is None else out_dtype

    x_bytes = jnp.dtype(x.dtype).itemsize
    out_bytes = jnp.dtype(out_dtype).itemsize
    compute_bytes = jnp.dtype(compute_dtype).itemsize

    vmem_limit, vmem_budget = _vmem_limit_and_budget()
    if tm is None:
        tm = _choose_tm(rows, model_dim, size, x_bytes, out_bytes,
                        compute_bytes, vmem_budget)

    # Flatten rows; features stay on the last (lane) axis — lane-dense whenever
    # model_dim is a multiple of 128 (true for the module default 2048).
    # NOTE: no dtype cast of x here (wrapper-side cast is an un-hidden HBM
    # round trip); the kernel casts the matmul operand on the VPU.
    x2d = x.reshape(rows, model_dim)
    w1c = w1.astype(compute_dtype)
    w2c = w2.astype(compute_dtype)
    b1f = b1.astype(jnp.float32)
    b2f = b2.astype(jnp.float32)

    grid = (pl.cdiv(rows, tm),)

    cost = pl.CostEstimate(
        flops=4 * rows * model_dim * size,  # two matmuls: 2*M*K*N each
        transcendentals=0,
        bytes_accessed=(rows * model_dim * (x_bytes + out_bytes)
                        + 2 * model_dim * size * compute_bytes
                        + (model_dim + size) * 4),
    )

    out2d = pl.pallas_call(
        _adapter_kernel,
        out_shape=jax.ShapeDtypeStruct((rows, model_dim), out_dtype),
        grid_spec=pltpu.PrefetchScalarGridSpec(
            num_scalar_prefetch=0,
            grid=grid,
            in_specs=[
                pl.BlockSpec((tm, model_dim), lambda i: (i, 0)),    # x row tile
                pl.BlockSpec((model_dim, size), lambda i: (0, 0)),  # w1 (full, resident)
                pl.BlockSpec((1, size), lambda i: (0, 0)),          # b1
                pl.BlockSpec((size, model_dim), lambda i: (0, 0)),  # w2 (full, resident)
                pl.BlockSpec((1, model_dim), lambda i: (0, 0)),     # b2
            ],
            out_specs=pl.BlockSpec((tm, model_dim), lambda i: (i, 0)),
        ),
        compiler_params=pltpu.CompilerParams(
            dimension_semantics=("parallel",),   # megacore sharding on v7x
            vmem_limit_bytes=vmem_limit,
        ),
        cost_estimate=cost,
    )(x2d, w1c, b1f, w2c, b2f)

    return out2d.reshape(batch, seq, model_dim)


def init_adapter_params(key, model_dim, size, dtype=jnp.float32):
    """Deterministic init mimicking torch.nn.Linear defaults (Kaiming uniform)."""
    k1, k2, k3, k4 = jax.random.split(key, 4)
    # Linear(model_dim -> size): torch weight is (size, model_dim); stored transposed.
    bound1 = 1.0 / jnp.sqrt(model_dim)
    w1 = jax.random.uniform(k1, (model_dim, size), dtype, -bound1, bound1)
    b1 = jax.random.uniform(k2, (1, size), dtype, -bound1, bound1)
    # Linear(size -> model_dim): torch weight is (model_dim, size); stored transposed.
    bound2 = 1.0 / jnp.sqrt(size)
    w2 = jax.random.uniform(k3, (size, model_dim), dtype, -bound2, bound2)
    b2 = jax.random.uniform(k4, (1, model_dim), dtype, -bound2, bound2)
    return w1, b1, w2, b2


def adapter_reference(x, w1, b1, w2, b2):
    h = jnp.maximum(x @ w1 + b1[0], 0.0)
    return h @ w2 + b2[0] + x


if __name__ == "__main__":
    key = jax.random.PRNGKey(0)
    k_x, k_p = jax.random.split(key)

    # Module defaults: Adapter(size=6, model_dim=2048) on a small
    # [batch=2, seq=8, model_dim=2048] activation tensor.
    batch, seq, model_dim, size = 2, 8, 2048, 6

    x = jax.random.normal(k_x, (batch, seq, model_dim), dtype=jnp.float32)
    w1, b1, w2, b2 = init_adapter_params(k_p, model_dim, size)

    ref = adapter_reference(x, w1, b1, w2, b2)

    # f32 compute path: exact-semantics check against the reference.
    out_f32 = adapter_forward(x, w1, b1, w2, b2, compute_dtype=jnp.float32)
    out_f32 = jax.block_until_ready(out_f32)
    assert out_f32.shape == x.shape and out_f32.dtype == x.dtype
    assert jnp.allclose(out_f32, ref, atol=1e-5, rtol=1e-5), "f32 path mismatch"

    # bf16 compute path (default): residual is exact f32 now, only the small
    # adapter delta carries bf16 error, so the tolerance is much tighter than
    # the previous version's 1e-1.
    out_bf16 = adapter_forward(x, w1, b1, w2, b2)
    out_bf16 = jax.block_until_ready(out_bf16)
    assert out_bf16.shape == x.shape and out_bf16.dtype == x.dtype
    assert jnp.allclose(out_bf16, ref, atol=5e-2, rtol=5e-2), "bf16 path mismatch"

    print("KERNEL_OK")
</pallas_src>

<mosaic_0001>
module attributes {stable_mosaic.version = 11 : i64} {
  func.func @_adapter_kernel(%arg0: i32, %arg1: memref<16x2048xf32, #tpu.memory_space<vmem>>, %arg2: memref<2048x6xf32, #tpu.memory_space<vmem>>, %arg3: memref<1x6xf32, #tpu.memory_space<vmem>>, %arg4: memref<6x2048xf32, #tpu.memory_space<vmem>>, %arg5: memref<1x2048xf32, #tpu.memory_space<vmem>>, %arg6: memref<16x2048xf32, #tpu.memory_space<vmem>>) attributes {dimension_semantics = [#tpu.dimension_semantics<parallel>], iteration_bounds = array<i64: 1>, scalar_prefetch = 0 : i64, scratch_operands = 0 : i64, tpu.core_type = #tpu.core_type<tc>, window_params = [{transform_indices = @transform_0, window_bounds = array<i64: 16, 2048>}, {pipeline_mode = #tpu.pipeline_mode<synchronous>, transform_indices = @transform_1, window_bounds = array<i64: 2048, 6>}, {pipeline_mode = #tpu.pipeline_mode<synchronous>, transform_indices = @transform_2, window_bounds = array<i64: 1, 6>}, {pipeline_mode = #tpu.pipeline_mode<synchronous>, transform_indices = @transform_3, window_bounds = array<i64: 6, 2048>}, {pipeline_mode = #tpu.pipeline_mode<synchronous>, transform_indices = @transform_4, window_bounds = array<i64: 1, 2048>}, {transform_indices = @transform_5, window_bounds = array<i64: 16, 2048>}]} {
    %c0 = arith.constant 0 : index
    %c0_0 = arith.constant 0 : index
    %0 = vector.load %arg1[%c0, %c0_0] : memref<16x2048xf32, #tpu.memory_space<vmem>>, vector<16x2048xf32>
    %c0_1 = arith.constant 0 : index
    %c0_2 = arith.constant 0 : index
    %1 = vector.load %arg2[%c0_1, %c0_2] : memref<2048x6xf32, #tpu.memory_space<vmem>>, vector<2048x6xf32>
    %cst = arith.constant dense<0.000000e+00> : vector<16x6xf32>
    %2 = tpu.matmul %0, %1, %cst {dimension_numbers = #tpu.dot_dimension_numbers<[1], [0], [0], [1], [0, 0, 1, 1], [], []>} : vector<16x2048xf32>, vector<2048x6xf32>, vector<16x6xf32> -> vector<16x6xf32>
    %c0_3 = arith.constant 0 : index
    %c0_4 = arith.constant 0 : index
    %3 = vector.load %arg3[%c0_3, %c0_4] : memref<1x6xf32, #tpu.memory_space<vmem>>, vector<1x6xf32>
    %4 = vector.broadcast %3 : vector<1x6xf32> to vector<16x6xf32>
    %5 = arith.addf %2, %4 : vector<16x6xf32>
    %cst_5 = arith.constant 0.000000e+00 : f32
    %6 = vector.broadcast %cst_5 : f32 to vector<16x6xf32>
    %7 = arith.maximumf %5, %6 : vector<16x6xf32>
    %c0_6 = arith.constant 0 : index
    %c0_7 = arith.constant 0 : index
    %8 = vector.load %arg4[%c0_6, %c0_7] : memref<6x2048xf32, #tpu.memory_space<vmem>>, vector<6x2048xf32>
    %cst_8 = arith.constant dense<0.000000e+00> : vector<16x2048xf32>
    %9 = tpu.matmul %7, %8, %cst_8 {dimension_numbers = #tpu.dot_dimension_numbers<[1], [0], [0], [1], [0, 0, 1, 1], [], []>} : vector<16x6xf32>, vector<6x2048xf32>, vector<16x2048xf32> -> vector<16x2048xf32>
    %c0_9 = arith.constant 0 : index
    %c0_10 = arith.constant 0 : index
    %10 = vector.load %arg5[%c0_9, %c0_10] : memref<1x2048xf32, #tpu.memory_space<vmem>>, vector<1x2048xf32>
    %11 = vector.broadcast %10 : vector<1x2048xf32> to vector<16x2048xf32>
    %12 = arith.addf %9, %11 : vector<16x2048xf32>
    %13 = arith.addf %12, %0 : vector<16x2048xf32>
    %c0_11 = arith.constant 0 : index
    %c0_12 = arith.constant 0 : index
    %14 = vector.load %arg6[%c0_11, %c0_12] : memref<16x2048xf32, #tpu.memory_space<vmem>>, vector<16x2048xf32>
    tpu.vector_store %arg6[%c0_11, %c0_12], %13 {strides = array<i32>} : memref<16x2048xf32, #tpu.memory_space<vmem>>, vector<16x2048xf32>,
    return
  }
  func.func @transform_0(%arg0: i32) -> (i32, i32) {
    %c0_i32 = arith.constant 0 : i32
    %c0_i32_0 = arith.constant 0 : i32
    return %arg0, %c0_i32 : i32, i32
  }
  func.func @transform_1(%arg0: i32) -> (i32, i32) {
    %c0_i32 = arith.constant 0 : i32
    %c0_i32_0 = arith.constant 0 : i32
    %c0_i32_1 = arith.constant 0 : i32
    return %c0_i32, %c0_i32_0 : i32, i32
  }
  func.func @transform_2(%arg0: i32) -> (i32, i32) {
    %c0_i32 = arith.constant 0 : i32
    %c0_i32_0 = arith.constant 0 : i32
    %c0_i32_1 = arith.constant 0 : i32
    return %c0_i32, %c0_i32_0 : i32, i32
  }
  func.func @transform_3(%arg0: i32) -> (i32, i32) {
    %c0_i32 = arith.constant 0 : i32
    %c0_i32_0 = arith.constant 0 : i32
    %c0_i32_1 = arith.constant 0 : i32
    return %c0_i32, %c0_i32_0 : i32, i32
  }
  func.func @transform_4(%arg0: i32) -> (i32, i32) {
    %c0_i32 = arith.constant 0 : i32
    %c0_i32_0 = arith.constant 0 : i32
    %c0_i32_1 = arith.constant 0 : i32
    return %c0_i32, %c0_i32_0 : i32, i32
  }
  func.func @transform_5(%arg0: i32) -> (i32, i32) {
    %c0_i32 = arith.constant 0 : i32
    %c0_i32_0 = arith.constant 0 : i32
    return %arg0, %c0_i32 : i32, i32
  }
}

</mosaic_0001>

<bundles_post_ra>
// kernel: tpu_custom_call.1
= control target key start
LH: loop header
LB: loop body
LE: loop exit
PB: predicated region body
PF: predicated region fallthrough
CT: control target
= control target key end

     0   :  { %s2472_s0 = inlined_call_operand.vmem [shape: f32[16,2048], index: 0, kind: input, shape index: {}]   ;;  %s2473_s1 = inlined_call_operand.vmem [shape: f32[2048,6], index: 1, kind: input, shape index: {}]   ;;  %s2474_s2 = inlined_call_operand.vmem [shape: f32[1,6], index: 2, kind: input, shape index: {}]   ;;  %s2475_s3 = inlined_call_operand.vmem [shape: f32[6,2048], index: 3, kind: input, shape index: {}]   ;;  %s2476_s4 = inlined_call_operand.vmem [shape: f32[1,2048], index: 4, kind: input, shape index: {}]   ;;  %s2477_s5 = inlined_call_operand.hbm [shape: f32[16,2048], index: 5, kind: output, shape index: {}]  }
   0x1   :  { %v68_v0 = vld [vmem:[%s2473_s1 + $0x78] sm:$0xff]  ;;  %v67_v2 = vld [vmem:[%s2473_s1 + $0x70] sm:$0xff]  ;;  %v66_v6 = vld [vmem:[%s2473_s1 + $0x68] sm:$0xff] }
   0x2   :  { %v100_v1 = vld [vmem:[%s2473_s1 + $0x178] sm:$0xff]  ;;  %313 = vmatpush.msra.mxu0 %v68_v0  ;;  %v99_v4 = vld [vmem:[%s2473_s1 + $0x170] sm:$0xff]  ;;  %v98_v8 = vld [vmem:[%s2473_s1 + $0x168] sm:$0xff] }
   0x3   :  { %359 = vmatpush.msra.mxu2 %v100_v1  ;;  %v84_v3 = vld [vmem:[%s2473_s1 + $0xf8] sm:$0xff]  ;;  %v83_v7 = vld [vmem:[%s2473_s1 + $0xf0] sm:$0xff]  ;;  %v82_v10 = vld [vmem:[%s2473_s1 + $0xe8] sm:$0xff] }
   0x4   :  { %v116_v5 = vld [vmem:[%s2473_s1 + $0x1f8] sm:$0xff]  ;;  %336 = vmatpush.msra.mxu1 %v84_v3  ;;  %314 = vmatpush.msra.mxu0 %v67_v2  ;;  %v115_v9 = vld [vmem:[%s2473_s1 + $0x1f0] sm:$0xff]  ;;  %v65_v11 = vld [vmem:[%s2473_s1 + $0x60] sm:$0xff] }
   0x5   :  { %382 = vmatpush.msra.mxu3 %v116_v5  ;;  %360 = vmatpush.msra.mxu2 %v99_v4  ;;  %v97_v12 = vld [vmem:[%s2473_s1 + $0x160] sm:$0xff]  ;;  %v114_v13 = vld [vmem:[%s2473_s1 + $0x1e8] sm:$0xff]  ;;  %v64_v16 = vld [vmem:[%s2473_s1 + $0x58] sm:$0xff] }
   0x6   :  { %337 = vmatpush.msra.mxu1 %v83_v7  ;;  %315 = vmatpush.msra.mxu0 %v66_v6  ;;  %v81_v14 = vld [vmem:[%s2473_s1 + $0xe0] sm:$0xff]  ;;  %v96_v17 = vld [vmem:[%s2473_s1 + $0x158] sm:$0xff]  ;;  %v63_v20 = vld [vmem:[%s2473_s1 + $0x50] sm:$0xff] }
   0x7   :  { %383 = vmatpush.msra.mxu3 %v115_v9  ;;  %361 = vmatpush.msra.mxu2 %v98_v8  ;;  %v113_v15 = vld [vmem:[%s2473_s1 + $0x1e0] sm:$0xff]  ;;  %v80_v18 = vld [vmem:[%s2473_s1 + $0xd8] sm:$0xff]  ;;  %v95_v21 = vld [vmem:[%s2473_s1 + $0x150] sm:$0xff] }
   0x8   :  { %338 = vmatpush.msra.mxu1 %v82_v10  ;;  %316 = vmatpush.msra.mxu0 %v65_v11  ;;  %v112_v19 = vld [vmem:[%s2473_s1 + $0x1d8] sm:$0xff]  ;;  %v79_v22 = vld [vmem:[%s2473_s1 + $0xd0] sm:$0xff]  ;;  %v62_v24 = vld [vmem:[%s2473_s1 + $0x48] sm:$0xff] }
   0x9   :  { %384 = vmatpush.msra.mxu3 %v114_v13  ;;  %362 = vmatpush.msra.mxu2 %v97_v12  ;;  %v111_v23 = vld [vmem:[%s2473_s1 + $0x1d0] sm:$0xff]  ;;  %v94_v25 = vld [vmem:[%s2473_s1 + $0x148] sm:$0xff]  ;;  %v61_v28 = vld [vmem:[%s2473_s1 + $0x40] sm:$0xff] }
   0xa   :  { %339 = vmatpush.msra.mxu1 %v81_v14  ;;  %317 = vmatpush.msra.mxu0 %v64_v16  ;;  %v78_v26 = vld [vmem:[%s2473_s1 + $0xc8] sm:$0xff]  ;;  %v93_v29 = vld [vmem:[%s2473_s1 + $0x140] sm:$0xff]  ;;  %v60_v32 = vld [vmem:[%s2473_s1 + $0x38] sm:$0xff] }
   0xb   :  { %385 = vmatpush.msra.mxu3 %v113_v15  ;;  %363 = vmatpush.msra.mxu2 %v96_v17  ;;  %v110_v27 = vld [vmem:[%s2473_s1 + $0x1c8] sm:$0xff]  ;;  %v77_v30 = vld [vmem:[%s2473_s1 + $0xc0] sm:$0xff]  ;;  %v92_v33 = vld [vmem:[%s2473_s1 + $0x138] sm:$0xff] }
   0xc   :  { %340 = vmatpush.msra.mxu1 %v80_v18  ;;  %318 = vmatpush.msra.mxu0 %v63_v20  ;;  %v109_v31 = vld [vmem:[%s2473_s1 + $0x1c0] sm:$0xff]  ;;  %v76_v34 = vld [vmem:[%s2473_s1 + $0xb8] sm:$0xff]  ;;  %v59_v36 = vld [vmem:[%s2473_s1 + $0x30] sm:$0xff] }
   0xd   :  { %386 = vmatpush.msra.mxu3 %v112_v19  ;;  %364 = vmatpush.msra.mxu2 %v95_v21  ;;  %v108_v35 = vld [vmem:[%s2473_s1 + $0x1b8] sm:$0xff]  ;;  %v91_v37 = vld [vmem:[%s2473_s1 + $0x130] sm:$0xff]  ;;  %v58_v40 = vld [vmem:[%s2473_s1 + $0x28] sm:$0xff] }
   0xe   :  { %341 = vmatpush.msra.mxu1 %v79_v22  ;;  %319 = vmatpush.msra.mxu0 %v62_v24  ;;  %v75_v38 = vld [vmem:[%s2473_s1 + $0xb0] sm:$0xff]  ;;  %v90_v41 = vld [vmem:[%s2473_s1 + $0x128] sm:$0xff]  ;;  %v57_v44 = vld [vmem:[%s2473_s1 + $0x20] sm:$0xff] }
   0xf   :  { %387 = vmatpush.msra.mxu3 %v111_v23  ;;  %365 = vmatpush.msra.mxu2 %v94_v25  ;;  %v107_v39 = vld [vmem:[%s2473_s1 + $0x1b0] sm:$0xff]  ;;  %v74_v42 = vld [vmem:[%s2473_s1 + $0xa8] sm:$0xff]  ;;  %v89_v45 = vld [vmem:[%s2473_s1 + $0x120] sm:$0xff] }
  0x10   :  { %342 = vmatpush.msra.mxu1 %v78_v26  ;;  %320 = vmatpush.msra.mxu0 %v61_v28  ;;  %v106_v43 = vld [vmem:[%s2473_s1 + $0x1a8] sm:$0xff]  ;;  %v73_v46 = vld [vmem:[%s2473_s1 + $0xa0] sm:$0xff]  ;;  %v56_v48 = vld [vmem:[%s2473_s1 + $0x18] sm:$0xff] }
  0x11   :  { %388 = vmatpush.msra.mxu3 %v110_v27  ;;  %366 = vmatpush.msra.mxu2 %v93_v29  ;;  %v105_v47 = vld [vmem:[%s2473_s1 + $0x1a0] sm:$0xff]  ;;  %v88_v49 = vld [vmem:[%s2473_s1 + $0x118] sm:$0xff]  ;;  %v55_v52 = vld [vmem:[%s2473_s1 + $0x10] sm:$0xff] }
  0x12   :  { %343 = vmatpush.msra.mxu1 %v77_v30  ;;  %321 = vmatpush.msra.mxu0 %v60_v32  ;;  %v72_v50 = vld [vmem:[%s2473_s1 + $0x98] sm:$0xff]  ;;  %v87_v53 = vld [vmem:[%s2473_s1 + $0x110] sm:$0xff]  ;;  %v54_v56 = vld [vmem:[%s2473_s1 + $0x8] sm:$0xff] }
  0x13   :  { %389 = vmatpush.msra.mxu3 %v109_v31  ;;  %367 = vmatpush.msra.mxu2 %v92_v33  ;;  %v104_v51 = vld [vmem:[%s2473_s1 + $0x198] sm:$0xff]  ;;  %v71_v54 = vld [vmem:[%s2473_s1 + $0x90] sm:$0xff]  ;;  %v86_v57 = vld [vmem:[%s2473_s1 + $0x108] sm:$0xff] }
  0x14   :  { %344 = vmatpush.msra.mxu1 %v76_v34  ;;  %322 = vmatpush.msra.mxu0 %v59_v36  ;;  %v103_v55 = vld [vmem:[%s2473_s1 + $0x190] sm:$0xff]  ;;  %v70_v58 = vld [vmem:[%s2473_s1 + $0x88] sm:$0xff]  ;;  %v53_v60 = vld [vmem:[%s2473_s1] sm:$0xff] }
  0x15   :  { %390 = vmatpush.msra.mxu3 %v108_v35  ;;  %368 = vmatpush.msra.mxu2 %v91_v37  ;;  %v102_v59 = vld [vmem:[%s2473_s1 + $0x188] sm:$0xff]  ;;  %v85_v61 = vld [vmem:[%s2473_s1 + $0x100] sm:$0xff]  ;;  %v132_v62 = vld [vmem:[%s2473_s1 + $0x278] sm:$0xff] }
  0x16   :  { %345 = vmatpush.msra.mxu1 %v75_v38  ;;  %323 = vmatpush.msra.mxu0 %v58_v40  ;;  %v164_v63 = vld [vmem:[%s2473_s1 + $0x378] sm:$0xff]  ;;  %v69_v0 = vld [vmem:[%s2473_s1 + $0x80] sm:$0xff]  ;;  %v131_v2 = vld [vmem:[%s2473_s1 + $0x270] sm:$0xff] }
  0x17   :  { %391 = vmatpush.msra.mxu3 %v107_v39  ;;  %369 = vmatpush.msra.mxu2 %v90_v41  ;;  %v101_v1 = vld [vmem:[%s2473_s1 + $0x180] sm:$0xff]  ;;  %v148_v3 = vld [vmem:[%s2473_s1 + $0x2f8] sm:$0xff]  ;;  %v163_v4 = vld [vmem:[%s2473_s1 + $0x370] sm:$0xff] }
  0x18   :  { %346 = vmatpush.msra.mxu1 %v74_v42  ;;  %324 = vmatpush.msra.mxu0 %v57_v44  ;;  %v180_v5 = vld [vmem:[%s2473_s1 + $0x3f8] sm:$0xff]  ;;  %v130_v6 = vld [vmem:[%s2473_s1 + $0x268] sm:$0xff]  ;;  %v147_v7 = vld [vmem:[%s2473_s1 + $0x2f0] sm:$0xff] }
  0x19   :  { %392 = vmatpush.msra.mxu3 %v106_v43  ;;  %370 = vmatpush.msra.mxu2 %v89_v45  ;;  %v162_v8 = vld [vmem:[%s2473_s1 + $0x368] sm:$0xff]  ;;  %v179_v9 = vld [vmem:[%s2473_s1 + $0x3f0] sm:$0xff]  ;;  %v129_v10 = vld [vmem:[%s2473_s1 + $0x260] sm:$0xff] }
  0x1a   :  { %347 = vmatpush.msra.mxu1 %v73_v46  ;;  %325 = vmatpush.msra.mxu0 %v56_v48  ;;  %v146_v11 = vld [vmem:[%s2473_s1 + $0x2e8] sm:$0xff]  ;;  %v161_v12 = vld [vmem:[%s2473_s1 + $0x360] sm:$0xff]  ;;  %v128_v14 = vld [vmem:[%s2473_s1 + $0x258] sm:$0xff] }
  0x1b   :  { %393 = vmatpush.msra.mxu3 %v105_v47  ;;  %371 = vmatpush.msra.mxu2 %v88_v49  ;;  %v178_v13 = vld [vmem:[%s2473_s1 + $0x3e8] sm:$0xff]  ;;  %v145_v15 = vld [vmem:[%s2473_s1 + $0x2e0] sm:$0xff]  ;;  %v160_v16 = vld [vmem:[%s2473_s1 + $0x358] sm:$0xff] }
  0x1c   :  { %348 = vmatpush.msra.mxu1 %v72_v50  ;;  %326 = vmatpush.msra.mxu0 %v55_v52  ;;  %v177_v17 = vld [vmem:[%s2473_s1 + $0x3e0] sm:$0xff]  ;;  %v127_v18 = vld [vmem:[%s2473_s1 + $0x250] sm:$0xff]  ;;  %v144_v19 = vld [vmem:[%s2473_s1 + $0x2d8] sm:$0xff] }
  0x1d   :  { %394 = vmatpush.msra.mxu3 %v104_v51  ;;  %372 = vmatpush.msra.mxu2 %v87_v53  ;;  %v159_v20 = vld [vmem:[%s2473_s1 + $0x350] sm:$0xff]  ;;  %v176_v21 = vld [vmem:[%s2473_s1 + $0x3d8] sm:$0xff]  ;;  %v126_v22 = vld [vmem:[%s2473_s1 + $0x248] sm:$0xff] }
  0x1e   :  { %349 = vmatpush.msra.mxu1 %v71_v54  ;;  %327 = vmatpush.msra.mxu0 %v54_v56  ;;  %v143_v23 = vld [vmem:[%s2473_s1 + $0x2d0] sm:$0xff]  ;;  %v158_v24 = vld [vmem:[%s2473_s1 + $0x348] sm:$0xff]  ;;  %v125_v26 = vld [vmem:[%s2473_s1 + $0x240] sm:$0xff] }
  0x1f   :  { %395 = vmatpush.msra.mxu3 %v103_v55  ;;  %373 = vmatpush.msra.mxu2 %v86_v57  ;;  %v175_v25 = vld [vmem:[%s2473_s1 + $0x3d0] sm:$0xff]  ;;  %v142_v27 = vld [vmem:[%s2473_s1 + $0x2c8] sm:$0xff]  ;;  %v157_v28 = vld [vmem:[%s2473_s1 + $0x340] sm:$0xff] }
  0x20   :  { %350 = vmatpush.msra.mxu1 %v70_v58  ;;  %328 = vmatpush.msra.mxu0 %v53_v60  ;;  %v174_v29 = vld [vmem:[%s2473_s1 + $0x3c8] sm:$0xff]  ;;  %v124_v30 = vld [vmem:[%s2473_s1 + $0x238] sm:$0xff]  ;;  %v141_v31 = vld [vmem:[%s2473_s1 + $0x2c0] sm:$0xff] }
  0x21   :  { %396 = vmatpush.msra.mxu3 %v102_v59  ;;  %374 = vmatpush.msra.mxu2 %v85_v61  ;;  %v156_v32 = vld [vmem:[%s2473_s1 + $0x338] sm:$0xff]  ;;  %v173_v33 = vld [vmem:[%s2473_s1 + $0x3c0] sm:$0xff]  ;;  %v123_v34 = vld [vmem:[%s2473_s1 + $0x230] sm:$0xff] }
  0x22   :  { %405 = vmatpush.msrb.mxu0 %v132_v62  ;;  %351 = vmatpush.msra.mxu1 %v69_v0  ;;  %v140_v35 = vld [vmem:[%s2473_s1 + $0x2b8] sm:$0xff]  ;;  %v155_v36 = vld [vmem:[%s2473_s1 + $0x330] sm:$0xff]  ;;  %v122_v38 = vld [vmem:[%s2473_s1 + $0x228] sm:$0xff] }
  0x23   :  { %451 = vmatpush.msrb.mxu2 %v164_v63  ;;  %397 = vmatpush.msra.mxu3 %v101_v1  ;;  %v172_v37 = vld [vmem:[%s2473_s1 + $0x3b8] sm:$0xff]  ;;  %v139_v39 = vld [vmem:[%s2473_s1 + $0x2b0] sm:$0xff]  ;;  %v154_v40 = vld [vmem:[%s2473_s1 + $0x328] sm:$0xff] }
  0x24   :  { %406 = vmatpush.msrb.mxu0 %v131_v2  ;;  %428 = vmatpush.msrb.mxu1 %v148_v3  ;;  %v171_v41 = vld [vmem:[%s2473_s1 + $0x3b0] sm:$0xff]  ;;  %v121_v42 = vld [vmem:[%s2473_s1 + $0x220] sm:$0xff]  ;;  %v138_v43 = vld [vmem:[%s2473_s1 + $0x2a8] sm:$0xff] }
  0x25   :  { %452 = vmatpush.msrb.mxu2 %v163_v4  ;;  %474 = vmatpush.msrb.mxu3 %v180_v5  ;;  %v153_v44 = vld [vmem:[%s2473_s1 + $0x320] sm:$0xff]  ;;  %v170_v45 = vld [vmem:[%s2473_s1 + $0x3a8] sm:$0xff]  ;;  %v23_v46 = vld [vmem:[%s2472_s0 + $0x10] sm:$0xff] }
  0x26   :  { %407 = vmatpush.msrb.mxu0 %v130_v6  ;;  %429 = vmatpush.msrb.mxu1 %v147_v7  ;;  %v120_v47 = vld [vmem:[%s2473_s1 + $0x218] sm:$0xff]  ;;  %v137_v48 = vld [vmem:[%s2473_s1 + $0x2a0] sm:$0xff]  ;;  %v119_v53 = vld [vmem:[%s2473_s1 + $0x210] sm:$0xff] }
  0x27   :  { %453 = vmatpush.msrb.mxu2 %v162_v8  ;;  %475 = vmatpush.msrb.mxu3 %v179_v9  ;;  %v152_v49 = vld [vmem:[%s2473_s1 + $0x318] sm:$0xff]  ;;  %v169_v50 = vld [vmem:[%s2473_s1 + $0x3a0] sm:$0xff]  ;;  %v151_v55 = vld [vmem:[%s2473_s1 + $0x310] sm:$0xff] }
  0x28   :  { %408 = vmatpush.msrb.mxu0 %v129_v10  ;;  %430 = vmatpush.msrb.mxu1 %v146_v11  ;;  %v1701_v51 = vld [vmem:[%s2472_s0] sm:$0xff]  ;;  %v1706_v52 = vld [vmem:[%s2472_s0 + $0x18] sm:$0xff]  ;;  %v1724_v57 = vld [vmem:[%s2472_s0 + $0x8] sm:$0xff] }
  0x29   :  { %454 = vmatpush.msrb.mxu2 %v161_v12  ;;  %476 = vmatpush.msrb.mxu3 %v178_v13  ;;  %v136_v54 = vld [vmem:[%s2473_s1 + $0x298] sm:$0xff]  ;;  %v118_v58 = vld [vmem:[%s2473_s1 + $0x208] sm:$0xff]  ;;  %v135_v59 = vld [vmem:[%s2473_s1 + $0x290] sm:$0xff] }
  0x2a   :  { %409 = vmatpush.msrb.mxu0 %v128_v14  ;;  %431 = vmatpush.msrb.mxu1 %v145_v15  ;;  %v168_v56 = vld [vmem:[%s2473_s1 + $0x398] sm:$0xff]  ;;  %v150_v60 = vld [vmem:[%s2473_s1 + $0x308] sm:$0xff]  ;;  %v167_v61 = vld [vmem:[%s2473_s1 + $0x390] sm:$0xff] }
  0x2b   :  { %455 = vmatpush.msrb.mxu2 %v160_v16  ;;  %477 = vmatpush.msrb.mxu3 %v177_v17  ;;  %v117_v62 = vld [vmem:[%s2473_s1 + $0x200] sm:$0xff]  ;;  %v134_v63 = vld [vmem:[%s2473_s1 + $0x288] sm:$0xff]  ;;  %v1755_v2 = vld [vmem:[%s2472_s0 + $0x90] sm:$0xff] }
  0x2c   :  { %410 = vmatpush.msrb.mxu0 %v127_v18  ;;  %432 = vmatpush.msrb.mxu1 %v144_v19  ;;  %v149_v0 = vld [vmem:[%s2473_s1 + $0x300] sm:$0xff]  ;;  %v166_v1 = vld [vmem:[%s2473_s1 + $0x388] sm:$0xff]  ;;  %v196_v3 = vld [vmem:[%s2473_s1 + $0x478] sm:$0xff] }
  0x2d   :  { %456 = vmatpush.msrb.mxu2 %v159_v20  ;;  %478 = vmatpush.msrb.mxu3 %v176_v21  ;;  %v228_v4 = vld [vmem:[%s2473_s1 + $0x578] sm:$0xff]  ;;  %v133_v5 = vld [vmem:[%s2473_s1 + $0x280] sm:$0xff]  ;;  %v195_v9 = vld [vmem:[%s2473_s1 + $0x470] sm:$0xff] }
  0x2e   :  { %411 = vmatpush.msrb.mxu0 %v126_v22  ;;  %433 = vmatpush.msrb.mxu1 %v143_v23  ;;  %v165_v6 = vld [vmem:[%s2473_s1 + $0x380] sm:$0xff]  ;;  %v1778_v8 = vld [vmem:[%s2472_s0 + $0x98] sm:$0xff] }
  0x2f   :  { %457 = vmatpush.msrb.mxu2 %v158_v24  ;;  %479 = vmatpush.msrb.mxu3 %v175_v25  ;;  %v1772_v7 = vld [vmem:[%s2472_s0 + $0x80] sm:$0xff] }
  0x30   :  { %412 = vmatpush.msrb.mxu0 %v125_v26  ;;  %434 = vmatpush.msrb.mxu1 %v142_v27 }
  0x31   :  { %458 = vmatpush.msrb.mxu2 %v157_v28  ;;  %480 = vmatpush.msrb.mxu3 %v174_v29 }
  0x32   :  { %413 = vmatpush.msrb.mxu0 %v124_v30  ;;  %435 = vmatpush.msrb.mxu1 %v141_v31 }
  0x33   :  { %459 = vmatpush.msrb.mxu2 %v156_v32  ;;  %481 = vmatpush.msrb.mxu3 %v173_v33 }
  0x34   :  { %414 = vmatpush.msrb.mxu0 %v123_v34  ;;  %436 = vmatpush.msrb.mxu1 %v140_v35 }
  0x35   :  { %460 = vmatpush.msrb.mxu2 %v155_v36  ;;  %482 = vmatpush.msrb.mxu3 %v172_v37 }
  0x36   :  { %415 = vmatpush.msrb.mxu0 %v122_v38  ;;  %437 = vmatpush.msrb.mxu1 %v139_v39 }
  0x37   :  { %461 = vmatpush.msrb.mxu2 %v154_v40  ;;  %483 = vmatpush.msrb.mxu3 %v171_v41 }
  0x38   :  { %416 = vmatpush.msrb.mxu0 %v121_v42  ;;  %438 = vmatpush.msrb.mxu1 %v138_v43 }
  0x39   :  { %462 = vmatpush.msrb.mxu2 %v153_v44  ;;  %484 = vmatpush.msrb.mxu3 %v170_v45 }
  0x3a   :  { %375 = vmatmul.f32.vlgmr.msra.gmra.mxu2 %v23_v46  ;;  %417 = vmatpush.msrb.mxu0 %v120_v47 }
  0x3b   :  { %439 = vmatpush.msrb.mxu1 %v137_v48  ;;  %463 = vmatpush.msrb.mxu2 %v152_v49 }
  0x3c   :  { %485 = vmatpush.msrb.mxu3 %v169_v50  ;;  %329 = vmatmul.f32.vlgmr.msra.gmra.mxu0 %v1701_v51 }
  0x3d   :  { %398 = vmatmul.f32.vlgmr.msra.gmra.mxu3 %v1706_v52  ;;  %418 = vmatpush.msrb.mxu0 %v119_v53 }
  0x3e   :  { %440 = vmatpush.msrb.mxu1 %v136_v54  ;;  %464 = vmatpush.msrb.mxu2 %v151_v55 }
  0x3f   :  { %486 = vmatpush.msrb.mxu3 %v168_v56  ;;  %352 = vmatmul.f32.vlgmr.msra.gmra.mxu1 %v1724_v57 }
  0x40   :  { %419 = vmatpush.msrb.mxu0 %v118_v58  ;;  %441 = vmatpush.msrb.mxu1 %v135_v59 }
  0x41   :  { %465 = vmatpush.msrb.mxu2 %v150_v60  ;;  %487 = vmatpush.msrb.mxu3 %v167_v61 }
  0x42   :  { %420 = vmatpush.msrb.mxu0 %v117_v62  ;;  %442 = vmatpush.msrb.mxu1 %v134_v63 }
  0x43   :  { %466 = vmatpush.msrb.mxu2 %v149_v0  ;;  %488 = vmatpush.msrb.mxu3 %v166_v1 }
  0x44   :  { %378 = vmatmul.f32.gmra.mxu2 %v1755_v2  ;;  %497 = vmatpush.msra.mxu0 %v196_v3 }
  0x45   :  { %10 = vsyncpa [#allocation3], 0  ;;  %543 = vmatpush.msra.mxu2 %v228_v4  ;;  %443 = vmatpush.msrb.mxu1 %v133_v5  ;;  %v212_v10 = vld [vmem:[%s2473_s1 + $0x4f8] sm:$0xff]  ;;  %v227_v11 = vld [vmem:[%s2473_s1 + $0x570] sm:$0xff]  ;;  %vm742_vm0 = vcmask 1045504   ;;  %vm735_vm1 = vcmask 48128  }
  0x46   :  { %489 = vmatpush.msrb.mxu3 %v165_v6  ;;  %332 = vmatmul.f32.gmra.mxu0 %v1772_v7  ;;  %v244_v12 = vld [vmem:[%s2473_s1 + $0x5f8] sm:$0xff]  ;;  %v1796_v13 = vld [vmem:[%s2472_s0 + $0x88] sm:$0xff]  ;;  %v211_v15 = vld [vmem:[%s2473_s1 + $0x4f0] sm:$0xff]  ;;  %s1229_s6 = sshll.u32 %s2477_s5, 4  ;;  %s1321_s7 = smov 2048   ;;  %s1230_s6 = int_to_ptr.hbm [resolvable:$true] %s1229_s6 }
  0x47   :  { %401 = vmatmul.f32.gmra.mxu3 %v1778_v8  ;;  %498 = vmatpush.msra.mxu0 %v195_v9  ;;  %v194_v14 = vld [vmem:[%s2473_s1 + $0x468] sm:$0xff]  ;;  %v243_v17 = vld [vmem:[%s2473_s1 + $0x5f0] sm:$0xff]  ;;  %v193_v18 = vld [vmem:[%s2473_s1 + $0x460] sm:$0xff]  ;;  %s1322_s8 = smov 128  }
  0x48   :  { %520 = vmatpush.msra.mxu1 %v212_v10  ;;  %544 = vmatpush.msra.mxu2 %v227_v11  ;;  %v226_v16 = vld [vmem:[%s2473_s1 + $0x568] sm:$0xff]  ;;  %v225_v20 = vld [vmem:[%s2473_s1 + $0x560] sm:$0xff]  ;;  %v1827_v22 = vld [vmem:[%s2472_s0 + $0x30] sm:$0xff] }
  0x49   :  { %566 = vmatpush.msra.mxu3 %v244_v12  ;;  %355 = vmatmul.f32.gmra.mxu1 %v1796_v13  ;;  %v210_v19 = vld [vmem:[%s2473_s1 + $0x4e8] sm:$0xff]  ;;  %v192_v23 = vld [vmem:[%s2473_s1 + $0x458] sm:$0xff]  ;;  %v209_v24 = vld [vmem:[%s2473_s1 + $0x4e0] sm:$0xff] }
  0x4a   :  { %499 = vmatpush.msra.mxu0 %v194_v14  ;;  %521 = vmatpush.msra.mxu1 %v211_v15  ;;  %v242_v21 = vld [vmem:[%s2473_s1 + $0x5e8] sm:$0xff]  ;;  %v224_v25 = vld [vmem:[%s2473_s1 + $0x558] sm:$0xff]  ;;  %v241_v26 = vld [vmem:[%s2473_s1 + $0x5e0] sm:$0xff] }
  0x4b   :  { %545 = vmatpush.msra.mxu2 %v226_v16  ;;  %567 = vmatpush.msra.mxu3 %v243_v17  ;;  %v1844_v27 = vld [vmem:[%s2472_s0 + $0x20] sm:$0xff]  ;;  %v1850_v28 = vld [vmem:[%s2472_s0 + $0x38] sm:$0xff]  ;;  %v191_v29 = vld [vmem:[%s2473_s1 + $0x450] sm:$0xff] }
  0x4c   :  { %500 = vmatpush.msra.mxu0 %v193_v18  ;;  %522 = vmatpush.msra.mxu1 %v210_v19  ;;  %v208_v30 = vld [vmem:[%s2473_s1 + $0x4d8] sm:$0xff]  ;;  %v223_v31 = vld [vmem:[%s2473_s1 + $0x550] sm:$0xff]  ;;  %v1868_v33 = vld [vmem:[%s2472_s0 + $0x28] sm:$0xff] }
  0x4d   :  { %546 = vmatpush.msra.mxu2 %v225_v20  ;;  %568 = vmatpush.msra.mxu3 %v242_v21  ;;  %v240_v32 = vld [vmem:[%s2473_s1 + $0x5d8] sm:$0xff]  ;;  %v190_v34 = vld [vmem:[%s2473_s1 + $0x448] sm:$0xff]  ;;  %v207_v35 = vld [vmem:[%s2473_s1 + $0x4d0] sm:$0xff] }
  0x4e   :  { %467 = vmatmul.f32.vlgmr.msrb.gmra.mxu2 %v1827_v22  ;;  %501 = vmatpush.msra.mxu0 %v192_v23  ;;  %v222_v36 = vld [vmem:[%s2473_s1 + $0x548] sm:$0xff]  ;;  %v239_v37 = vld [vmem:[%s2473_s1 + $0x5d0] sm:$0xff]  ;;  %v189_v38 = vld [vmem:[%s2473_s1 + $0x440] sm:$0xff] }
  0x4f   :  { %523 = vmatpush.msra.mxu1 %v209_v24  ;;  %547 = vmatpush.msra.mxu2 %v224_v25  ;;  %v206_v39 = vld [vmem:[%s2473_s1 + $0x4c8] sm:$0xff]  ;;  %v221_v40 = vld [vmem:[%s2473_s1 + $0x540] sm:$0xff]  ;;  %v188_v42 = vld [vmem:[%s2473_s1 + $0x438] sm:$0xff] }
  0x50   :  { %569 = vmatpush.msra.mxu3 %v241_v26  ;;  %421 = vmatmul.f32.vlgmr.msrb.gmra.mxu0 %v1844_v27  ;;  %v238_v41 = vld [vmem:[%s2473_s1 + $0x5c8] sm:$0xff]  ;;  %v205_v43 = vld [vmem:[%s2473_s1 + $0x4c0] sm:$0xff]  ;;  %v220_v44 = vld [vmem:[%s2473_s1 + $0x538] sm:$0xff] }
  0x51   :  { %490 = vmatmul.f32.vlgmr.msrb.gmra.mxu3 %v1850_v28  ;;  %502 = vmatpush.msra.mxu0 %v191_v29  ;;  %v237_v45 = vld [vmem:[%s2473_s1 + $0x5c0] sm:$0xff]  ;;  %v187_v46 = vld [vmem:[%s2473_s1 + $0x430] sm:$0xff]  ;;  %v204_v47 = vld [vmem:[%s2473_s1 + $0x4b8] sm:$0xff] }
  0x52   :  { %524 = vmatpush.msra.mxu1 %v208_v30  ;;  %548 = vmatpush.msra.mxu2 %v223_v31  ;;  %v219_v48 = vld [vmem:[%s2473_s1 + $0x530] sm:$0xff]  ;;  %v236_v49 = vld [vmem:[%s2473_s1 + $0x5b8] sm:$0xff]  ;;  %v186_v50 = vld [vmem:[%s2473_s1 + $0x428] sm:$0xff] }
  0x53   :  { %570 = vmatpush.msra.mxu3 %v240_v32  ;;  %444 = vmatmul.f32.vlgmr.msrb.gmra.mxu1 %v1868_v33  ;;  %v203_v53 = vld [vmem:[%s2473_s1 + $0x4b0] sm:$0xff]  ;;  %v218_v54 = vld [vmem:[%s2473_s1 + $0x528] sm:$0xff]  ;;  %v185_v56 = vld [vmem:[%s2473_s1 + $0x420] sm:$0xff] }
  0x54   :  { %503 = vmatpush.msra.mxu0 %v190_v34  ;;  %525 = vmatpush.msra.mxu1 %v207_v35  ;;  %v235_v55 = vld [vmem:[%s2473_s1 + $0x5b0] sm:$0xff]  ;;  %v202_v58 = vld [vmem:[%s2473_s1 + $0x4a8] sm:$0xff]  ;;  %v217_v59 = vld [vmem:[%s2473_s1 + $0x520] sm:$0xff] }
  0x55   :  { %549 = vmatpush.msra.mxu2 %v222_v36  ;;  %571 = vmatpush.msra.mxu3 %v239_v37  ;;  %v234_v60 = vld [vmem:[%s2473_s1 + $0x5a8] sm:$0xff]  ;;  %v1947_v61 = vld [vmem:[%s2472_s0 + $0xa0] sm:$0xff]  ;;  %v1952_v62 = vld [vmem:[%s2472_s0 + $0xb0] sm:$0xff] }
  0x56   :  { %504 = vmatpush.msra.mxu0 %v189_v38  ;;  %526 = vmatpush.msra.mxu1 %v206_v39  ;;  %v184_v63 = vld [vmem:[%s2473_s1 + $0x418] sm:$0xff]  ;;  %v201_v0 = vld [vmem:[%s2473_s1 + $0x4a0] sm:$0xff]  ;;  %v1971_v4 = vld [vmem:[%s2472_s0 + $0xa8] sm:$0xff] }
  0x57   :  { %550 = vmatpush.msra.mxu2 %v221_v40  ;;  %572 = vmatpush.msra.mxu3 %v238_v41  ;;  %v216_v1 = vld [vmem:[%s2473_s1 + $0x518] sm:$0xff]  ;;  %v233_v3 = vld [vmem:[%s2473_s1 + $0x5a0] sm:$0xff]  ;;  %v183_v6 = vld [vmem:[%s2473_s1 + $0x410] sm:$0xff] }
  0x58   :  { %505 = vmatpush.msra.mxu0 %v188_v42  ;;  %527 = vmatpush.msra.mxu1 %v205_v43  ;;  %v1976_v5 = vld [vmem:[%s2472_s0 + $0xb8] sm:$0xff]  ;;  %v215_v10 = vld [vmem:[%s2473_s1 + $0x510] sm:$0xff]  ;;  %v182_v12 = vld [vmem:[%s2473_s1 + $0x408] sm:$0xff] }
  0x59   :  { %551 = vmatpush.msra.mxu2 %v220_v44  ;;  %573 = vmatpush.msra.mxu3 %v237_v45  ;;  %v200_v9 = vld [vmem:[%s2473_s1 + $0x498] sm:$0xff]  ;;  %v199_v14 = vld [vmem:[%s2473_s1 + $0x490] sm:$0xff]  ;;  %v214_v15 = vld [vmem:[%s2473_s1 + $0x508] sm:$0xff] }
  0x5a   :  { %506 = vmatpush.msra.mxu0 %v187_v46  ;;  %528 = vmatpush.msra.mxu1 %v204_v47  ;;  %v232_v11 = vld [vmem:[%s2473_s1 + $0x598] sm:$0xff]  ;;  %v231_v16 = vld [vmem:[%s2473_s1 + $0x590] sm:$0xff]  ;;  %v181_v17 = vld [vmem:[%s2473_s1 + $0x400] sm:$0xff] }
  0x5b   :  { %552 = vmatpush.msra.mxu2 %v219_v48  ;;  %574 = vmatpush.msra.mxu3 %v236_v49  ;;  %v198_v18 = vld [vmem:[%s2473_s1 + $0x488] sm:$0xff]  ;;  %v213_v19 = vld [vmem:[%s2473_s1 + $0x500] sm:$0xff]  ;;  %v2024_v23 = vld [vmem:[%s2472_s0 + $0x50] sm:$0xff] }
  0x5c   :  { %507 = vmatpush.msra.mxu0 %v186_v50  ;;  %529 = vmatpush.msra.mxu1 %v203_v53  ;;  %v230_v20 = vld [vmem:[%s2473_s1 + $0x588] sm:$0xff]  ;;  %v2019_v21 = vld [vmem:[%s2472_s0 + $0x40] sm:$0xff]  ;;  %v260_v24 = vld [vmem:[%s2473_s1 + $0x678] sm:$0xff] }
  0x5d   :  { %553 = vmatpush.msra.mxu2 %v218_v54  ;;  %575 = vmatpush.msra.mxu3 %v235_v55  ;;  %v292_v25 = vld [vmem:[%s2473_s1 + $0x778] sm:$0xff]  ;;  %v197_v26 = vld [vmem:[%s2473_s1 + $0x480] sm:$0xff]  ;;  %v2043_v30 = vld [vmem:[%s2472_s0 + $0x48] sm:$0xff] }
  0x5e   :  { %508 = vmatpush.msra.mxu0 %v185_v56  ;;  %530 = vmatpush.msra.mxu1 %v202_v58  ;;  %v229_v29 = vld [vmem:[%s2473_s1 + $0x580] sm:$0xff]  ;;  %v2048_v31 = vld [vmem:[%s2472_s0 + $0x58] sm:$0xff]  ;;  %v259_v32 = vld [vmem:[%s2473_s1 + $0x670] sm:$0xff] }
  0x5f   :  { %554 = vmatpush.msra.mxu2 %v217_v59  ;;  %576 = vmatpush.msra.mxu3 %v234_v60  ;;  %v276_v34 = vld [vmem:[%s2473_s1 + $0x6f8] sm:$0xff]  ;;  %v291_v35 = vld [vmem:[%s2473_s1 + $0x770] sm:$0xff]  ;;  %v258_v37 = vld [vmem:[%s2473_s1 + $0x668] sm:$0xff] }
  0x60   :  { %424 = vmatmul.f32.gmra.mxu0 %v1947_v61  ;;  %470 = vmatmul.f32.gmra.mxu2 %v1952_v62  ;;  %v308_v36 = vld [vmem:[%s2473_s1 + $0x7f8] sm:$0xff]  ;;  %v275_v38 = vld [vmem:[%s2473_s1 + $0x6f0] sm:$0xff]  ;;  %v290_v39 = vld [vmem:[%s2473_s1 + $0x768] sm:$0xff] }
  0x61   :  { %509 = vmatpush.msra.mxu0 %v184_v63  ;;  %531 = vmatpush.msra.mxu1 %v201_v0  ;;  %v307_v40 = vld [vmem:[%s2473_s1 + $0x7f0] sm:$0xff]  ;;  %v257_v41 = vld [vmem:[%s2473_s1 + $0x660] sm:$0xff]  ;;  %v274_v42 = vld [vmem:[%s2473_s1 + $0x6e8] sm:$0xff] }
  0x62   :  { %555 = vmatpush.msra.mxu2 %v216_v1  ;;  %577 = vmatpush.msra.mxu3 %v233_v3  ;;  %v289_v43 = vld [vmem:[%s2473_s1 + $0x760] sm:$0xff]  ;;  %v306_v44 = vld [vmem:[%s2473_s1 + $0x7e8] sm:$0xff]  ;;  %v2091_v45 = vld [vmem:[%s2472_s0 + $0xd0] sm:$0xff] }
  0x63   :  { %447 = vmatmul.f32.gmra.mxu1 %v1971_v4  ;;  %493 = vmatmul.f32.gmra.mxu3 %v1976_v5  ;;  %v256_v46 = vld [vmem:[%s2473_s1 + $0x658] sm:$0xff]  ;;  %v273_v47 = vld [vmem:[%s2473_s1 + $0x6e0] sm:$0xff]  ;;  %v255_v54 = vld [vmem:[%s2473_s1 + $0x650] sm:$0xff] }
  0x64   :  { %510 = vmatpush.msra.mxu0 %v183_v6  ;;  %532 = vmatpush.msra.mxu1 %v200_v9  ;;  %v288_v48 = vld [vmem:[%s2473_s1 + $0x758] sm:$0xff]  ;;  %v305_v49 = vld [vmem:[%s2473_s1 + $0x7e0] sm:$0xff]  ;;  %v287_v56 = vld [vmem:[%s2473_s1 + $0x750] sm:$0xff] }
  0x65   :  { %556 = vmatpush.msra.mxu2 %v215_v10  ;;  %578 = vmatpush.msra.mxu3 %v232_v11  ;;  %v2108_v50 = vld [vmem:[%s2472_s0 + $0xc0] sm:$0xff]  ;;  %v2114_v53 = vld [vmem:[%s2472_s0 + $0xd8] sm:$0xff]  ;;  %v2132_v59 = vld [vmem:[%s2472_s0 + $0xc8] sm:$0xff] }
  0x66   :  { %511 = vmatpush.msra.mxu0 %v182_v12  ;;  %533 = vmatpush.msra.mxu1 %v199_v14  ;;  %v272_v55 = vld [vmem:[%s2473_s1 + $0x6d8] sm:$0xff]  ;;  %v254_v60 = vld [vmem:[%s2473_s1 + $0x648] sm:$0xff]  ;;  %v271_v63 = vld [vmem:[%s2473_s1 + $0x6d0] sm:$0xff] }
  0x67   :  { %557 = vmatpush.msra.mxu2 %v214_v15  ;;  %579 = vmatpush.msra.mxu3 %v231_v16  ;;  %v304_v58 = vld [vmem:[%s2473_s1 + $0x7d8] sm:$0xff]  ;;  %v286_v0 = vld [vmem:[%s2473_s1 + $0x748] sm:$0xff]  ;;  %v303_v1 = vld [vmem:[%s2473_s1 + $0x7d0] sm:$0xff] }
  0x68   :  { %512 = vmatpush.msra.mxu0 %v181_v17  ;;  %534 = vmatpush.msra.mxu1 %v198_v18  ;;  %v253_v3 = vld [vmem:[%s2473_s1 + $0x640] sm:$0xff]  ;;  %v270_v6 = vld [vmem:[%s2473_s1 + $0x6c8] sm:$0xff]  ;;  %v252_v11 = vld [vmem:[%s2473_s1 + $0x638] sm:$0xff] }
  0x69   :  { %558 = vmatpush.msra.mxu2 %v213_v19  ;;  %580 = vmatpush.msra.mxu3 %v230_v20  ;;  %v285_v9 = vld [vmem:[%s2473_s1 + $0x740] sm:$0xff]  ;;  %v302_v10 = vld [vmem:[%s2473_s1 + $0x7c8] sm:$0xff]  ;;  %v284_v14 = vld [vmem:[%s2473_s1 + $0x738] sm:$0xff] }
  0x6a   :  { %513 = vmatmul.f32.vlgmr.msra.gmra.mxu0 %v2019_v21  ;;  %559 = vmatmul.f32.vlgmr.msra.gmra.mxu2 %v2024_v23  ;;  %v269_v12 = vld [vmem:[%s2473_s1 + $0x6c0] sm:$0xff]  ;;  %v251_v16 = vld [vmem:[%s2473_s1 + $0x630] sm:$0xff]  ;;  %v268_v17 = vld [vmem:[%s2473_s1 + $0x6b8] sm:$0xff] }
  0x6b   :  { %589 = vmatpush.msrb.mxu0 %v260_v24  ;;  %635 = vmatpush.msrb.mxu2 %v292_v25  ;;  %v301_v15 = vld [vmem:[%s2473_s1 + $0x7c0] sm:$0xff]  ;;  %v283_v18 = vld [vmem:[%s2473_s1 + $0x730] sm:$0xff]  ;;  %v300_v19 = vld [vmem:[%s2473_s1 + $0x7b8] sm:$0xff] }
  0x6c   :  { %535 = vmatpush.msra.mxu1 %v197_v26  ;;  %581 = vmatpush.msra.mxu3 %v229_v29  ;;  %v250_v20 = vld [vmem:[%s2473_s1 + $0x628] sm:$0xff]  ;;  %v267_v24 = vld [vmem:[%s2473_s1 + $0x6b0] sm:$0xff]  ;;  %v249_v29 = vld [vmem:[%s2473_s1 + $0x620] sm:$0xff] }
  0x6d   :  { %536 = vmatmul.f32.vlgmr.msra.gmra.mxu1 %v2043_v30  ;;  %582 = vmatmul.f32.vlgmr.msra.gmra.mxu3 %v2048_v31  ;;  %v282_v25 = vld [vmem:[%s2473_s1 + $0x728] sm:$0xff]  ;;  %v299_v26 = vld [vmem:[%s2473_s1 + $0x7b0] sm:$0xff] }
  0x6e   :  { %590 = vmatpush.msrb.mxu0 %v259_v32  ;;  %612 = vmatpush.msrb.mxu1 %v276_v34  ;;  %v266_v32 = vld [vmem:[%s2473_s1 + $0x6a8] sm:$0xff]  ;;  %v281_v34 = vld [vmem:[%s2473_s1 + $0x720] sm:$0xff] }
  0x6f   :  { %636 = vmatpush.msrb.mxu2 %v291_v35  ;;  %658 = vmatpush.msrb.mxu3 %v308_v36  ;;  %v298_v35 = vld [vmem:[%s2473_s1 + $0x7a8] sm:$0xff]  ;;  %v248_v36 = vld [vmem:[%s2473_s1 + $0x618] sm:$0xff] }
  0x70   :  { %591 = vmatpush.msrb.mxu0 %v258_v37  ;;  %613 = vmatpush.msrb.mxu1 %v275_v38  ;;  %v265_v37 = vld [vmem:[%s2473_s1 + $0x6a0] sm:$0xff]  ;;  %v280_v38 = vld [vmem:[%s2473_s1 + $0x718] sm:$0xff] }
  0x71   :  { %637 = vmatpush.msrb.mxu2 %v290_v39  ;;  %659 = vmatpush.msrb.mxu3 %v307_v40  ;;  %v297_v39 = vld [vmem:[%s2473_s1 + $0x7a0] sm:$0xff]  ;;  %v247_v40 = vld [vmem:[%s2473_s1 + $0x610] sm:$0xff] }
  0x72   :  { %592 = vmatpush.msrb.mxu0 %v257_v41  ;;  %614 = vmatpush.msrb.mxu1 %v274_v42  ;;  %v264_v41 = vld [vmem:[%s2473_s1 + $0x698] sm:$0xff]  ;;  %v279_v42 = vld [vmem:[%s2473_s1 + $0x710] sm:$0xff] }
  0x73   :  { %638 = vmatpush.msrb.mxu2 %v289_v43  ;;  %660 = vmatpush.msrb.mxu3 %v306_v44  ;;  %v296_v43 = vld [vmem:[%s2473_s1 + $0x798] sm:$0xff]  ;;  %v246_v44 = vld [vmem:[%s2473_s1 + $0x608] sm:$0xff] }
  0x74   :  { %562 = vmatmul.f32.gmra.mxu2 %v2091_v45  ;;  %593 = vmatpush.msrb.mxu0 %v256_v46  ;;  %v263_v46 = vld [vmem:[%s2473_s1 + $0x690] sm:$0xff] }
  0x75   :  { %615 = vmatpush.msrb.mxu1 %v273_v47  ;;  %639 = vmatpush.msrb.mxu2 %v288_v48  ;;  %v278_v47 = vld [vmem:[%s2473_s1 + $0x708] sm:$0xff]  ;;  %v295_v48 = vld [vmem:[%s2473_s1 + $0x790] sm:$0xff] }
  0x76   :  { %661 = vmatpush.msrb.mxu3 %v305_v49  ;;  %516 = vmatmul.f32.gmra.mxu0 %v2108_v50  ;;  %v245_v49 = vld [vmem:[%s2473_s1 + $0x600] sm:$0xff] }
  0x77   :  { %585 = vmatmul.f32.gmra.mxu3 %v2114_v53  ;;  %594 = vmatpush.msrb.mxu0 %v255_v54  ;;  %v262_v54 = vld [vmem:[%s2473_s1 + $0x688] sm:$0xff] }
  0x78   :  { %616 = vmatpush.msrb.mxu1 %v272_v55  ;;  %640 = vmatpush.msrb.mxu2 %v287_v56  ;;  %v277_v55 = vld [vmem:[%s2473_s1 + $0x700] sm:$0xff]  ;;  %v294_v56 = vld [vmem:[%s2473_s1 + $0x788] sm:$0xff] }
  0x79   :  { %662 = vmatpush.msrb.mxu3 %v304_v58  ;;  %539 = vmatmul.f32.gmra.mxu1 %v2132_v59  ;;  %v2259_v58 = vld [vmem:[%s2472_s0 + $0x60] sm:$0xff] }
  0x7a   :  { %595 = vmatpush.msrb.mxu0 %v254_v60  ;;  %617 = vmatpush.msrb.mxu1 %v271_v63  ;;  %v2264_v60 = vld [vmem:[%s2472_s0 + $0x70] sm:$0xff]  ;;  %v261_v63 = vld [vmem:[%s2473_s1 + $0x680] sm:$0xff] }
  0x7b   :  { %641 = vmatpush.msrb.mxu2 %v286_v0  ;;  %663 = vmatpush.msrb.mxu3 %v303_v1  ;;  %v293_v0 = vld [vmem:[%s2473_s1 + $0x780] sm:$0xff]  ;;  %v2275_v1 = vld [vmem:[%s2472_s0 + $0x68] sm:$0xff] }
  0x7c   :  { %596 = vmatpush.msrb.mxu0 %v253_v3  ;;  %618 = vmatpush.msrb.mxu1 %v270_v6  ;;  %v2280_v3 = vld [vmem:[%s2472_s0 + $0x78] sm:$0xff]  ;;  %v2289_v6 = vld [vmem:[%s2472_s0 + $0xe0] sm:$0xff] }
  0x7d   :  { %642 = vmatpush.msrb.mxu2 %v285_v9  ;;  %664 = vmatpush.msrb.mxu3 %v302_v10  ;;  %v2294_v9 = vld [vmem:[%s2472_s0 + $0xf0] sm:$0xff]  ;;  %v2299_v10 = vld [vmem:[%s2472_s0 + $0xe8] sm:$0xff] }
  0x7e   :  { %597 = vmatpush.msrb.mxu0 %v252_v11  ;;  %619 = vmatpush.msrb.mxu1 %v269_v12  ;;  %v2304_v11 = vld [vmem:[%s2472_s0 + $0xf8] sm:$0xff] }
  0x7f   :  { %643 = vmatpush.msrb.mxu2 %v284_v14  ;;  %665 = vmatpush.msrb.mxu3 %v301_v15 }
  0x80   :  { %598 = vmatpush.msrb.mxu0 %v251_v16  ;;  %620 = vmatpush.msrb.mxu1 %v268_v17  ;;  %v685_v17 = vld [vmem:[%s2475_s3 + $0x10] sm:$0x3f] }
  0x81   :  { %644 = vmatpush.msrb.mxu2 %v283_v18  ;;  %666 = vmatpush.msrb.mxu3 %v300_v19  ;;  %v686_v18 = vld [vmem:[%s2475_s3 + $0x18] sm:$0x3f] }
  0x82   :  { %599 = vmatpush.msrb.mxu0 %v250_v20  ;;  %621 = vmatpush.msrb.mxu1 %v267_v24  ;;  %v1292_v20 = vld [vmem:[%s2474_s2] ss:$0 sm:$0xff] }
  0x83   :  { %645 = vmatpush.msrb.mxu2 %v282_v25  ;;  %667 = vmatpush.msrb.mxu3 %v299_v26 }
  0x84   :  { %600 = vmatpush.msrb.mxu0 %v249_v29  ;;  %622 = vmatpush.msrb.mxu1 %v266_v32 }
  0x85   :  { %646 = vmatpush.msrb.mxu2 %v281_v34  ;;  %668 = vmatpush.msrb.mxu3 %v298_v35 }
  0x86   :  { %601 = vmatpush.msrb.mxu0 %v248_v36  ;;  %623 = vmatpush.msrb.mxu1 %v265_v37 }
  0x87   :  { %647 = vmatpush.msrb.mxu2 %v280_v38  ;;  %669 = vmatpush.msrb.mxu3 %v297_v39 }
  0x88   :  { %602 = vmatpush.msrb.mxu0 %v247_v40  ;;  %624 = vmatpush.msrb.mxu1 %v264_v41 }
  0x89   :  { %648 = vmatpush.msrb.mxu2 %v279_v42  ;;  %670 = vmatpush.msrb.mxu3 %v296_v43  ;;  %v683_v42 = vld [vmem:[%s2475_s3] sm:$0x3f]  ;;  %v684_v43 = vld [vmem:[%s2475_s3 + $0x8] sm:$0x3f] }
  0x8a   :  { %603 = vmatpush.msrb.mxu0 %v246_v44  ;;  %625 = vmatpush.msrb.mxu1 %v263_v46 }
  0x8b   :  { %649 = vmatpush.msrb.mxu2 %v278_v47  ;;  %671 = vmatpush.msrb.mxu3 %v295_v48 }
  0x8c   :  { %604 = vmatpush.msrb.mxu0 %v245_v49  ;;  %626 = vmatpush.msrb.mxu1 %v262_v54 }
  0x8d   :  { %650 = vmatpush.msrb.mxu2 %v277_v55  ;;  %672 = vmatpush.msrb.mxu3 %v294_v56 }
  0x8e   :  { %605 = vmatmul.f32.vlgmr.msrb.gmra.mxu0 %v2259_v58  ;;  %651 = vmatmul.f32.vlgmr.msrb.gmra.mxu2 %v2264_v60 }
  0x8f   :  { %627 = vmatpush.msrb.mxu1 %v261_v63  ;;  %673 = vmatpush.msrb.mxu3 %v293_v0 }
  0x90   :  { %628 = vmatmul.f32.vlgmr.msrb.gmra.mxu1 %v2275_v1  ;;  %674 = vmatmul.f32.vlgmr.msrb.gmra.mxu3 %v2280_v3 }
  0x91   :  { %1247 = vmatpush.msk.msra.mxu2 %vm742_vm0, %v685_v17  ;;  %1250 = vmatpush.msk.msra.mxu3 %vm742_vm0, %v686_v18 }
  0x92   :  { %1241 = vmatpush.msk.msra.mxu0 %vm742_vm0, %v683_v42  ;;  %1244 = vmatpush.msk.msra.mxu1 %vm742_vm0, %v684_v43 }
  0x96   :  { %608 = vmatmul.f32.gmra.mxu0 %v2289_v6  ;;  %654 = vmatmul.f32.gmra.mxu2 %v2294_v9 }
  0x98   :  { %631 = vmatmul.f32.gmra.mxu1 %v2299_v10  ;;  %677 = vmatmul.f32.gmra.mxu3 %v2304_v11 }
  0xb9   :  { %v330_v12 = vpop.f32.mrf.mxu0 }
  0xba   :  { %v331_v25 = vadd.f32 %v1292_v20, %v330_v12  ;;  %v689_v12 = vld [vmem:[%s2475_s3 + $0x30] sm:$0x3f] }
  0xbb   :  { %1259 = vmatpush.msk.msrb.mxu2 %vm742_vm0, %v689_v12 }
  0xbc   :  { %v353_v14 = vpop.f32.mrf.mxu1 }
  0xbd   :  { %v376_v15 = vpop.f32.mrf.mxu2  ;;  %v354_v32 = vadd.f32 %v353_v14, %v331_v25  ;;  %v690_v14 = vld [vmem:[%s2475_s3 + $0x38] sm:$0x3f] }
  0xbe   :  { %1262 = vmatpush.msk.msrb.mxu3 %vm742_vm0, %v690_v14 }
  0xbf   :  { %v377_v37 = vadd.f32 %v376_v15, %v354_v32 }
  0xc0   :  { %v399_v16 = vpop.f32.mrf.mxu3 }
  0xc1   :  { %v400_v40 = vadd.f32 %v399_v16, %v377_v37 }
  0xc3   :  { %v333_v19 = vpop.f32.mrf.mxu0 }
  0xc4   :  { %v334_v34 = vadd.f32 %v1292_v20, %v333_v19  ;;  %v687_v20 = vld [vmem:[%s2475_s3 + $0x20] sm:$0x3f] }
  0xc5   :  { %1253 = vmatpush.msk.msrb.mxu0 %vm742_vm0, %v687_v20  ;;  %v692_v20 = vld [vmem:[%s2475_s3 + $0x48] sm:$0x3f] }
  0xc6   :  { %v356_v24 = vpop.f32.mrf.mxu1 }
  0xc7   :  { %v379_v26 = vpop.f32.mrf.mxu2  ;;  %v357_v38 = vadd.f32 %v356_v24, %v334_v34  ;;  %v688_v24 = vld [vmem:[%s2475_s3 + $0x28] sm:$0x3f] }
  0xc8   :  { %1256 = vmatpush.msk.msrb.mxu1 %vm742_vm0, %v688_v24 }
  0xc9   :  { %v380_v41 = vadd.f32 %v379_v26, %v357_v38 }
  0xca   :  { %v402_v29 = vpop.f32.mrf.mxu3 }
  0xcb   :  { %v403_v48 = vadd.f32 %v402_v29, %v380_v41 }
  0xcd   :  { %v422_v35 = vpop.f32.mrf.mxu0 }
  0xce   :  { %v423_v49 = vadd.f32 %v422_v35, %v400_v40 }
  0xd0   :  { %v445_v36 = vpop.f32.mrf.mxu1 }
  0xd1   :  { %v468_v39 = vpop.f32.mrf.mxu2  ;;  %v446_v55 = vadd.f32 %v445_v36, %v423_v49 }
  0xd3   :  { %v469_v15 = vadd.f32 %v468_v39, %v446_v55 }
  0xd4   :  { %v491_v44 = vpop.f32.mrf.mxu3 }
  0xd5   :  { %v492_v18 = vadd.f32 %v491_v44, %v469_v15 }
  0xdd   :  { %v425_v46 = vpop.f32.mrf.mxu0 }
  0xde   :  { %v426_v56 = vadd.f32 %v425_v46, %v403_v48 }
  0xe0   :  { %v448_v47 = vpop.f32.mrf.mxu1 }
  0xe1   :  { %v449_v16 = vadd.f32 %v448_v47, %v426_v56 }
  0xe3   :  { %v471_v54 = vpop.f32.mrf.mxu2 }
  0xe4   :  { %v472_v19 = vadd.f32 %v471_v54, %v449_v16  ;;  %v693_v16 = vld [vmem:[%s2475_s3 + $0x50] sm:$0x3f] }
  0xe6   :  { %v494_v63 = vpop.f32.mrf.mxu3 }
  0xe7   :  { %v514_v0 = vpop.f32.mrf.mxu0  ;;  %v495_v32 = vadd.f32 %v494_v63, %v472_v19  ;;  %v691_v19 = vld [vmem:[%s2475_s3 + $0x40] sm:$0x3f] }
  0xe8   :  { %v515_v26 = vadd.f32 %v514_v0, %v492_v18 }
  0xea   :  { %v537_v17 = vpop.f32.mrf.mxu1 }
  0xeb   :  { %v538_v35 = vadd.f32 %v537_v17, %v515_v26  ;;  %v694_v17 = vld [vmem:[%s2475_s3 + $0x58] sm:$0x3f] }
  0xed   :  { %v560_v25 = vpop.f32.mrf.mxu2 }
  0xee   :  { %v561_v37 = vadd.f32 %v560_v25, %v538_v35  ;;  %v698_v35 = vld [vmem:[%s2475_s3 + $0x78] sm:$0x3f] }
  0xf0   :  { %v583_v29 = vpop.f32.mrf.mxu3 }
  0xf1   :  { %v584_v40 = vadd.f32 %v583_v29, %v561_v37  ;;  %v696_v37 = vld [vmem:[%s2475_s3 + $0x68] sm:$0x3f] }
  0xf3   :  { %v517_v34 = vpop.f32.mrf.mxu0 }
  0xf4   :  { %v518_v38 = vadd.f32 %v517_v34, %v495_v32  ;;  %v697_v34 = vld [vmem:[%s2475_s3 + $0x70] sm:$0x3f] }
  0xf6   :  { %v540_v36 = vpop.f32.mrf.mxu1 }
  0xf7   :  { %v563_v39 = vpop.f32.mrf.mxu2  ;;  %v541_v41 = vadd.f32 %v540_v36, %v518_v38  ;;  %v695_v36 = vld [vmem:[%s2475_s3 + $0x60] sm:$0x3f] }
  0xf8   :  { %v2412_v38 = vld [vmem:[%s2476_s4] sm:$0xff] }
  0xf9   :  { %v564_v47 = vadd.f32 %v563_v39, %v541_v41  ;;  %v703_v39 = vperm.slane %v2412_v38, 0 }
  0xfa   :  { %v586_v42 = vpop.f32.mrf.mxu3 }
  0xfb   :  { %v587_v54 = vadd.f32 %v586_v42, %v564_v47 }
 0x10b   :  { %v606_v43 = vpop.f32.mrf.mxu0 }
 0x10c   :  { %v607_v44 = vadd.f32 %v606_v43, %v584_v40  ;;  %v704_v40 = vperm.slane %v2412_v38, 1 }
 0x10d   :  { %v629_v46 = vpop.f32.mrf.mxu1 }
 0x10e   :  { %v630_v48 = vadd.f32 %v629_v46, %v607_v44 }
 0x111   :  { %v652_v49 = vpop.f32.mrf.mxu2 }
 0x112   :  { %v653_v55 = vadd.f32 %v652_v49, %v630_v48  ;;  %v705_v48 = vperm.slane %v2412_v38, 2  ;;  %v706_v49 = vperm.slane %v2412_v38, 3 }
 0x113   :  { %v609_v56 = vpop.f32.mrf.mxu0  ;;  %v675_v0 = vpop.f32.mrf.mxu3 }
 0x114   :  { %v610_v63 = vadd.f32 %v609_v56, %v587_v54  ;;  %v676_v12 = vadd.f32 %v675_v0, %v653_v55 }
 0x115   :  { %v632_v14 = vpop.f32.mrf.mxu1 }
 0x116   :  { %v681_v15 = vmax.f32 %v676_v12, 0.0  ;;  %v633_v18 = vadd.f32 %v632_v14, %v610_v63 }
 0x118   :  { %1242 = vmatmul.msk.f32.vlgmr.msra.gmra.mxu0 %vm735_vm1, %v681_v15  ;;  %1245 = vmatmul.msk.f32.vlgmr.msra.gmra.mxu1 %vm735_vm1, %v681_v15 }
 0x119   :  { %1248 = vmatmul.msk.f32.vlgmr.msra.gmra.mxu2 %vm735_vm1, %v681_v15  ;;  %1251 = vmatmul.msk.f32.vlgmr.msra.gmra.mxu3 %vm735_vm1, %v681_v15  ;;  %v655_v24 = vpop.f32.mrf.mxu2 }
 0x11a   :  { %v656_v25 = vadd.f32 %v655_v24, %v633_v18  ;;  %1271 = vmatpush.msk.msra.mxu2 %vm742_vm0, %v693_v16  ;;  %1274 = vmatpush.msk.msra.mxu3 %vm742_vm0, %v694_v17 }
 0x11b   :  { %v678_v26 = vpop.f32.mrf.mxu3  ;;  %1265 = vmatpush.msk.msra.mxu0 %vm742_vm0, %v691_v19  ;;  %1268 = vmatpush.msk.msra.mxu1 %vm742_vm0, %v692_v20  ;;  %v707_v19 = vperm.slane %v2412_v38, 4  ;;  %v708_v20 = vperm.slane %v2412_v38, 5 }
 0x11c   :  { %v679_v29 = vadd.f32 %v678_v26, %v656_v25 }
 0x11e   :  { %v682_v32 = vmax.f32 %v679_v29, 0.0 }
 0x120   :  { %1243 = vmatmul.msk.f32.gmra.mxu0 %vm735_vm1, %v682_v32  ;;  %1246 = vmatmul.msk.f32.gmra.mxu1 %vm735_vm1, %v682_v32 }
 0x121   :  { %1249 = vmatmul.msk.f32.gmra.mxu2 %vm735_vm1, %v682_v32  ;;  %1252 = vmatmul.msk.f32.gmra.mxu3 %vm735_vm1, %v682_v32 }
 0x128   :  { %1254 = vmatmul.msk.f32.vlgmr.msrb.gmra.mxu0 %vm735_vm1, %v681_v15  ;;  %1257 = vmatmul.msk.f32.vlgmr.msrb.gmra.mxu1 %vm735_vm1, %v681_v15 }
 0x129   :  { %1260 = vmatmul.msk.f32.vlgmr.msrb.gmra.mxu2 %vm735_vm1, %v681_v15  ;;  %1263 = vmatmul.msk.f32.vlgmr.msrb.gmra.mxu3 %vm735_vm1, %v681_v15 }
 0x12a   :  { %1283 = vmatpush.msk.msrb.mxu2 %vm742_vm0, %v697_v34  ;;  %1286 = vmatpush.msk.msrb.mxu3 %vm742_vm0, %v698_v35 }
 0x12b   :  { %1277 = vmatpush.msk.msrb.mxu0 %vm742_vm0, %v695_v36  ;;  %1280 = vmatpush.msk.msrb.mxu1 %vm742_vm0, %v696_v37 }
 0x130   :  { %1255 = vmatmul.msk.f32.gmra.mxu0 %vm735_vm1, %v682_v32  ;;  %1258 = vmatmul.msk.f32.gmra.mxu1 %vm735_vm1, %v682_v32 }
 0x131   :  { %1261 = vmatmul.msk.f32.gmra.mxu2 %vm735_vm1, %v682_v32  ;;  %1264 = vmatmul.msk.f32.gmra.mxu3 %vm735_vm1, %v682_v32 }
 0x138   :  { %1266 = vmatmul.msk.f32.vlgmr.msra.gmra.mxu0 %vm735_vm1, %v681_v15  ;;  %1269 = vmatmul.msk.f32.vlgmr.msra.gmra.mxu1 %vm735_vm1, %v681_v15 }
 0x139   :  { %1272 = vmatmul.msk.f32.vlgmr.msra.gmra.mxu2 %vm735_vm1, %v681_v15  ;;  %1275 = vmatmul.msk.f32.vlgmr.msra.gmra.mxu3 %vm735_vm1, %v681_v15 }
 0x140   :  { %1267 = vmatmul.msk.f32.gmra.mxu0 %vm735_vm1, %v682_v32  ;;  %1270 = vmatmul.msk.f32.gmra.mxu1 %vm735_vm1, %v682_v32 }
 0x141   :  { %1273 = vmatmul.msk.f32.gmra.mxu2 %vm735_vm1, %v682_v32  ;;  %1276 = vmatmul.msk.f32.gmra.mxu3 %vm735_vm1, %v682_v32 }
 0x148   :  { %1278 = vmatmul.msk.f32.vlgmr.msrb.gmra.mxu0 %vm735_vm1, %v681_v15  ;;  %1281 = vmatmul.msk.f32.vlgmr.msrb.gmra.mxu1 %vm735_vm1, %v681_v15 }
 0x149   :  { %1284 = vmatmul.msk.f32.vlgmr.msrb.gmra.mxu2 %vm735_vm1, %v681_v15  ;;  %1287 = vmatmul.msk.f32.vlgmr.msrb.gmra.mxu3 %vm735_vm1, %v681_v15 }
 0x150   :  { %1279 = vmatmul.msk.f32.gmra.mxu0 %vm735_vm1, %v682_v32  ;;  %1282 = vmatmul.msk.f32.gmra.mxu1 %vm735_vm1, %v682_v32 }
 0x151   :  { %1285 = vmatmul.msk.f32.gmra.mxu2 %vm735_vm1, %v682_v32  ;;  %1288 = vmatmul.msk.f32.gmra.mxu3 %vm735_vm1, %v682_v32 }
 0x195   :  { %v808_v41 = vpop.f32.mrf.mxu0  ;;  %v831_v42 = vpop.f32.mrf.mxu1 }
 0x196   :  { %v809_v43 = vadd.f32 %v808_v41, %v703_v39  ;;  %v832_v44 = vadd.f32 %v831_v42, %v704_v40 }
 0x198   :  { %v1159_v46 = vadd.f32 %v809_v43, %v1701_v51  ;;  %v1160_v47 = vadd.f32 %v832_v44, %v1724_v57  ;;  %v1293_v51 = vld [vmem:[%s2472_s0 + $0x10] sm:$0xff] }
 0x19a   :  { %1191 = vst [vmem:[#allocation2] sm:$0xff] %v1159_v46 }
 0x19b   :  { %1192 = vst [vmem:[#allocation2 + $0x8] sm:$0xff] %v1160_v47 }
 0x19c   :  { %v854_v54 = vpop.f32.mrf.mxu2  ;;  %v877_v55 = vpop.f32.mrf.mxu3 }
 0x19d   :  { %v855_v56 = vadd.f32 %v854_v54, %v705_v48  ;;  %v878_v0 = vadd.f32 %v877_v55, %v706_v49  ;;  %v811_v63 = vpop.f32.mrf.mxu0  ;;  %v834_v12 = vpop.f32.mrf.mxu1 }
 0x19e   :  { %v812_v14 = vadd.f32 %v811_v63, %v703_v39  ;;  %v835_v15 = vadd.f32 %v834_v12, %v704_v40  ;;  %v709_v39 = vperm.slane %v2412_v38, 6  ;;  %v710_v40 = vperm.slane %v2412_v38, 7 }
 0x19f   :  { %v1161_v16 = vadd.f32 %v1293_v51, %v855_v56  ;;  %v1162_v57 = vadd.f32 %v878_v0, %v1706_v52 }
 0x1a0   :  { %v1175_v17 = vadd.f32 %v812_v14, %v1772_v7  ;;  %v1176_v18 = vadd.f32 %v835_v15, %v1796_v13 }
 0x1a1   :  { %1193 = vst [vmem:[#allocation2 + $0x10] sm:$0xff] %v1161_v16 }
 0x1a2   :  { %1194 = vst [vmem:[#allocation2 + $0x18] sm:$0xff] %v1162_v57 }
 0x1a3   :  { %1207 = vst [vmem:[#allocation2 + $0x80] sm:$0xff] %v1175_v17 }
 0x1a4   :  { %1208 = vst [vmem:[#allocation2 + $0x88] sm:$0xff] %v1176_v18  ;;  %v857_v24 = vpop.f32.mrf.mxu2  ;;  %v880_v25 = vpop.f32.mrf.mxu3 }
 0x1a5   :  { %v858_v26 = vadd.f32 %v857_v24, %v705_v48  ;;  %v881_v29 = vadd.f32 %v880_v25, %v706_v49  ;;  %v900_v32 = vpop.f32.mrf.mxu0  ;;  %v923_v34 = vpop.f32.mrf.mxu1  ;;  %v2439_v48 = vld [vmem:[%s2476_s4 + $0x8] sm:$0xff]  ;;  %s1320_s4 = smov [#allocation2]  }
 0x1a6   :  { %v901_v35 = vadd.f32 %v900_v32, %v707_v19  ;;  %v924_v52 = vadd.f32 %v923_v34, %v708_v20  ;;  %v711_v54 = vperm.slane %v2439_v48, 0  ;;  %v712_v55 = vperm.slane %v2439_v48, 1  ;;  %s1227_s28 = sshll.u32 %s1320_s4, 4  ;;  %s1228_s28 = int_to_ptr.vmem [resolvable:$true] %s1227_s28 }
 0x1a7   :  { %v1177_v7 = vadd.f32 %v858_v26, %v1755_v2  ;;  %v1178_v13 = vadd.f32 %v881_v29, %v1778_v8  ;;  %v713_v57 = vperm.slane %v2439_v48, 2  ;;  %v714_v17 = vperm.slane %v2439_v48, 3 }
 0x1a8   :  { %v1163_v36 = vadd.f32 %v901_v35, %v1844_v27  ;;  %v1164_v37 = vadd.f32 %v924_v52, %v1868_v33  ;;  %v715_v34 = vperm.slane %v2439_v48, 4  ;;  %v716_v35 = vperm.slane %v2439_v48, 5 }
 0x1a9   :  { %1209 = vst [vmem:[#allocation2 + $0x90] sm:$0xff] %v1177_v7 }
 0x1aa   :  { %1210 = vst [vmem:[#allocation2 + $0x98] sm:$0xff] %v1178_v13 }
 0x1ab   :  { %1195 = vst [vmem:[#allocation2 + $0x20] sm:$0xff] %v1163_v36 }
 0x1ac   :  { %1196 = vst [vmem:[#allocation2 + $0x28] sm:$0xff] %v1164_v37  ;;  %v946_v41 = vpop.f32.mrf.mxu2  ;;  %v969_v42 = vpop.f32.mrf.mxu3 }
 0x1ad   :  { %v947_v43 = vadd.f32 %v946_v41, %v709_v39  ;;  %v970_v44 = vadd.f32 %v969_v42, %v710_v40  ;;  %v903_v46 = vpop.f32.mrf.mxu0  ;;  %v926_v2 = vpop.f32.mrf.mxu1  ;;  %v717_v42 = vperm.slane %v2439_v48, 6 }
 0x1ae   :  { %v904_v47 = vadd.f32 %v903_v46, %v707_v19  ;;  %v927_v8 = vadd.f32 %v926_v2, %v708_v20 }
 0x1af   :  { %v1165_v27 = vadd.f32 %v947_v43, %v1827_v22  ;;  %v1166_v33 = vadd.f32 %v970_v44, %v1850_v28  ;;  %v718_v43 = vperm.slane %v2439_v48, 7 }
 0x1b0   :  { %v1179_v38 = vadd.f32 %v904_v47, %v1947_v61  ;;  %v1180_v49 = vadd.f32 %v927_v8, %v1971_v4 }
 0x1b1   :  { %1197 = vst [vmem:[#allocation2 + $0x30] sm:$0xff] %v1165_v27 }
 0x1b2   :  { %1198 = vst [vmem:[#allocation2 + $0x38] sm:$0xff] %v1166_v33 }
 0x1b3   :  { %1211 = vst [vmem:[#allocation2 + $0xa0] sm:$0xff] %v1179_v38 }
 0x1b4   :  { %1212 = vst [vmem:[#allocation2 + $0xa8] sm:$0xff] %v1180_v49  ;;  %v949_v22 = vpop.f32.mrf.mxu2  ;;  %v972_v56 = vpop.f32.mrf.mxu3 }
 0x1b5   :  { %v950_v28 = vadd.f32 %v949_v22, %v709_v39  ;;  %v973_v0 = vadd.f32 %v972_v56, %v710_v40  ;;  %v992_v63 = vpop.f32.mrf.mxu0  ;;  %v1015_v12 = vpop.f32.mrf.mxu1 }
 0x1b6   :  { %v993_v14 = vadd.f32 %v992_v63, %v711_v54  ;;  %v1016_v15 = vadd.f32 %v1015_v12, %v712_v55 }
 0x1b7   :  { %v1181_v61 = vadd.f32 %v950_v28, %v1952_v62  ;;  %v1182_v4 = vadd.f32 %v973_v0, %v1976_v5 }
 0x1b8   :  { %v1167_v51 = vadd.f32 %v993_v14, %v2019_v21  ;;  %v1168_v16 = vadd.f32 %v1016_v15, %v2043_v30 }
 0x1b9   :  { %1213 = vst [vmem:[#allocation2 + $0xb0] sm:$0xff] %v1181_v61 }
 0x1ba   :  { %1214 = vst [vmem:[#allocation2 + $0xb8] sm:$0xff] %v1182_v4 }
 0x1bb   :  { %1199 = vst [vmem:[#allocation2 + $0x40] sm:$0xff] %v1167_v51 }
 0x1bc   :  { %1200 = vst [vmem:[#allocation2 + $0x48] sm:$0xff] %v1168_v16  ;;  %v1038_v18 = vpop.f32.mrf.mxu2  ;;  %v1061_v19 = vpop.f32.mrf.mxu3 }
 0x1bd   :  { %v1039_v20 = vadd.f32 %v1038_v18, %v713_v57  ;;  %v1062_v24 = vadd.f32 %v1061_v19, %v714_v17  ;;  %v995_v25 = vpop.f32.mrf.mxu0  ;;  %v1018_v62 = vpop.f32.mrf.mxu1 }
 0x1be   :  { %v996_v26 = vadd.f32 %v995_v25, %v711_v54  ;;  %v1019_v5 = vadd.f32 %v1018_v62, %v712_v55 }
 0x1bf   :  { %v1169_v21 = vadd.f32 %v1039_v20, %v2024_v23  ;;  %v1170_v30 = vadd.f32 %v1062_v24, %v2048_v31 }
 0x1c0   :  { %v1183_v29 = vadd.f32 %v996_v26, %v2108_v50  ;;  %v1184_v32 = vadd.f32 %v1019_v5, %v2132_v59 }
 0x1c1   :  { %1201 = vst [vmem:[#allocation2 + $0x50] sm:$0xff] %v1169_v21 }
 0x1c2   :  { %1202 = vst [vmem:[#allocation2 + $0x58] sm:$0xff] %v1170_v30 }
 0x1c3   :  { %1215 = vst [vmem:[#allocation2 + $0xc0] sm:$0xff] %v1183_v29 }
 0x1c4   :  { %1216 = vst [vmem:[#allocation2 + $0xc8] sm:$0xff] %v1184_v32  ;;  %v1041_v52 = vpop.f32.mrf.mxu2  ;;  %v1064_v7 = vpop.f32.mrf.mxu3 }
 0x1c5   :  { %v1042_v13 = vadd.f32 %v1041_v52, %v713_v57  ;;  %v1065_v36 = vadd.f32 %v1064_v7, %v714_v17  ;;  %v1084_v37 = vpop.f32.mrf.mxu0  ;;  %v1107_v23 = vpop.f32.mrf.mxu1 }
 0x1c6   :  { %v1085_v39 = vadd.f32 %v1084_v37, %v715_v34  ;;  %v1108_v31 = vadd.f32 %v1107_v23, %v716_v35 }
 0x1c7   :  { %v1185_v50 = vadd.f32 %v1042_v13, %v2091_v45  ;;  %v1186_v59 = vadd.f32 %v1065_v36, %v2114_v53 }
 0x1c8   :  { %v1171_v40 = vadd.f32 %v1085_v39, %v2259_v58  ;;  %v1172_v41 = vadd.f32 %v1108_v31, %v2275_v1 }
 0x1c9   :  { %1217 = vst [vmem:[#allocation2 + $0xd0] sm:$0xff] %v1185_v50 }
 0x1ca   :  { %1218 = vst [vmem:[#allocation2 + $0xd8] sm:$0xff] %v1186_v59 }
 0x1cb   :  { %1203 = vst [vmem:[#allocation2 + $0x60] sm:$0xff] %v1171_v40 }
 0x1cc   :  { %1204 = vst [vmem:[#allocation2 + $0x68] sm:$0xff] %v1172_v41  ;;  %v1130_v44 = vpop.f32.mrf.mxu2  ;;  %v1153_v46 = vpop.f32.mrf.mxu3 }
 0x1cd   :  { %v1131_v2 = vadd.f32 %v1130_v44, %v717_v42  ;;  %v1154_v47 = vadd.f32 %v1153_v46, %v718_v43  ;;  %v1087_v8 = vpop.f32.mrf.mxu0  ;;  %v1110_v45 = vpop.f32.mrf.mxu1 }
 0x1ce   :  { %v1088_v27 = vadd.f32 %v1087_v8, %v715_v34  ;;  %v1111_v53 = vadd.f32 %v1110_v45, %v716_v35 }
 0x1cf   :  { %v1173_v58 = vadd.f32 %v1131_v2, %v2264_v60  ;;  %v1174_v1 = vadd.f32 %v1154_v47, %v2280_v3 }
 0x1d0   :  { %v1187_v33 = vadd.f32 %v1088_v27, %v2289_v6  ;;  %v1188_v38 = vadd.f32 %v1111_v53, %v2299_v10 }
 0x1d1   :  { %1205 = vst [vmem:[#allocation2 + $0x70] sm:$0xff] %v1173_v58 }
 0x1d2   :  { %1206 = vst [vmem:[#allocation2 + $0x78] sm:$0xff] %v1174_v1 }
 0x1d3   :  { %1219 = vst [vmem:[#allocation2 + $0xe0] sm:$0xff] %v1187_v33 }
 0x1d4   :  { %1220 = vst [vmem:[#allocation2 + $0xe8] sm:$0xff] %v1188_v38  ;;  %v1133_v48 = vpop.f32.mrf.mxu2  ;;  %v1156_v49 = vpop.f32.mrf.mxu3 }
 0x1d5   :  { %v1134_v54 = vadd.f32 %v1133_v48, %v717_v42  ;;  %v1157_v60 = vadd.f32 %v1156_v49, %v718_v43 }
 0x1d7   :  { %v1189_v3 = vadd.f32 %v1134_v54, %v2294_v9  ;;  %v1190_v6 = vadd.f32 %v1157_v60, %v2304_v11 }
 0x1d9   :  { %1221 = vst [vmem:[#allocation2 + $0xf0] sm:$0xff] %v1189_v3 }
 0x1da   :  { %1222 = vst [vmem:[#allocation2 + $0xf8] sm:$0xff] %v1190_v6 }
 0x1db   :  { %1235 = dma.vmem_to_hbm [thread:$0]  %s1228_s28, 4096, %s1230_s6, [#allocation3], %s1321_s7, %s1321_s7, %s1322_s8  }
 0x1dc   :  { %1318 = dma.done.wait [#allocation3], 4096  }
 0x1dd   :  { %1319 = vsyncadd [#allocation3], 4294963200 }
 0x1de   :  { %1240 = vsyncpa [#allocation3], 1 }

</bundles_post_ra>
